<compile_context>
chip_gen: v7x
topology: tpu7x:2x2x1
jax: 0.10.0
libtpu: 0.0.40
codegen_flags: <defaults>
</compile_context>

<pallas_src>
import functools
import math

import jax
import jax.numpy as jnp
from jax.experimental import pallas as pl
from jax.experimental.pallas import tpu as pltpu

LANE = 128  # lane-dense minor dims (also covers bf16 16-row sublane packing)


def _round_up(x, m):
    return ((x + m - 1) // m) * m


def _mxu_rows():
    """Target block-diagonal tile rows: 128 on v5*, 256 on v6e/v7x."""
    try:
        kind = jax.devices()[0].device_kind.lower()
    except Exception:
        return 256
    return 128 if "v5" in kind else 256


def gcn_kernel(adj_ref, x_ref, w1_ref, w2_ref, out_ref, *, l1_adj_first, l2_adj_first):
    """One graph-group: out = adj @ relu(adj @ x @ w1) @ w2 (bf16 MXU, f32 acc)."""
    adj = adj_ref[...]                                        # bf16 [tm, tm]
    x = x_ref[...]                                            # bf16 [tm, fp]

    # ---- layer 1: relu(adj @ x @ w1)
    if l1_adj_first:                                          # (adj @ x) @ w1
        t = jnp.dot(adj, x, preferred_element_type=jnp.float32)
        h = jnp.dot(t.astype(jnp.bfloat16), w1_ref[...],
                    preferred_element_type=jnp.float32)
    else:                                                     # adj @ (x @ w1)
        t = jnp.dot(x, w1_ref[...], preferred_element_type=jnp.float32)
        h = jnp.dot(adj, t.astype(jnp.bfloat16),
                    preferred_element_type=jnp.float32)
    h = jnp.maximum(h, 0.0).astype(jnp.bfloat16)              # ReLU in f32, bf16 for MXU

    # ---- layer 2: adj @ h @ w2
    if l2_adj_first:                                          # (adj @ h) @ w2
        t2 = jnp.dot(adj, h, preferred_element_type=jnp.float32)
        o = jnp.dot(t2.astype(jnp.bfloat16), w2_ref[...],
                    preferred_element_type=jnp.float32)
    else:                                                     # adj @ (h @ w2)
        t2 = jnp.dot(h, w2_ref[...], preferred_element_type=jnp.float32)
        o = jnp.dot(adj, t2.astype(jnp.bfloat16),
                    preferred_element_type=jnp.float32)

    out_ref[...] = o.astype(out_ref.dtype)                    # lane-dense f32 store


def _gcn_pallas(adj_g, x_g, w1_p, w2_p):
    """Grid over graph-groups; each step consumes one MXU-sized block-diag tile."""
    num_groups, tm, _ = adj_g.shape
    fp, hp = w1_p.shape
    gp = w2_p.shape[1]

    l1_adj_first = fp <= hp   # (adj@x)@w1 cheaper iff F_in <= H
    l2_adj_first = hp <= gp   # (adj@h)@w2 cheaper iff H    <= F_out

    # Advisory cost model so XLA schedules neighboring pad/cast/slice ops sanely.
    if l1_adj_first:
        flops_l1 = 2 * tm * tm * fp + 2 * tm * fp * hp
    else:
        flops_l1 = 2 * tm * fp * hp + 2 * tm * tm * hp
    if l2_adj_first:
        flops_l2 = 2 * tm * tm * hp + 2 * tm * hp * gp
    else:
        flops_l2 = 2 * tm * hp * gp + 2 * tm * tm * gp
    flops = num_groups * (flops_l1 + flops_l2)
    bytes_accessed = (num_groups * tm * tm * 2     # adj (bf16)
                      + num_groups * tm * fp * 2   # features (bf16)
                      + fp * hp * 2 + hp * gp * 2  # weights (bf16)
                      + num_groups * tm * gp * 4)  # output (f32)

    kernel = functools.partial(gcn_kernel,
                               l1_adj_first=l1_adj_first,
                               l2_adj_first=l2_adj_first)

    return pl.pallas_call(
        kernel,
        out_shape=jax.ShapeDtypeStruct((num_groups, tm, gp), jnp.float32),
        grid=(num_groups,),
        in_specs=[
            pl.BlockSpec((None, tm, tm), lambda g: (g, 0, 0)),   # per-group adj
            pl.BlockSpec((None, tm, fp), lambda g: (g, 0, 0)),   # per-group features
            pl.BlockSpec((fp, hp), lambda g: (0, 0)),            # shared W1
            pl.BlockSpec((hp, gp), lambda g: (0, 0)),            # shared W2
        ],
        out_specs=pl.BlockSpec((None, tm, gp), lambda g: (g, 0, 0)),
        compiler_params=pltpu.CompilerParams(
            dimension_semantics=("parallel",)),                  # engages both TCs on v7x
        cost_estimate=pl.CostEstimate(flops=flops, transcendentals=0,
                                      bytes_accessed=bytes_accessed),
    )(adj_g, x_g, w1_p, w2_p)


@jax.jit
def gcn_forward_batched(adj_b, features_b, w1, w2):
    """Run B independent small graphs, packed G-per-group block-diagonally.

    Each group is one MXU-sized (tile_m x tile_m) block-diagonal adjacency;
    the pallas grid iterates over groups so cost is linear in B.
    Off-diagonal zero blocks keep per-graph semantics exact.
    """
    b, n, _ = adj_b.shape
    f_in, hid = w1.shape
    f_out = w2.shape[1]

    # --- static packing decision (trace-time Python on shapes) ---
    target = _mxu_rows()
    g = 1 if n >= target else min(max(1, target // n), b)   # graphs per group
    num_groups = -(-b // g)
    rows = g * n
    tile_m = _round_up(rows, LANE)                           # lane-dense adj minor dim
    fp, hp, gp = (_round_up(d, LANE) for d in (f_in, hid, f_out))

    # --- pack in bf16 BEFORE block-diag build / padding (halves HBM traffic) ---
    adj_bf = adj_b.astype(jnp.bfloat16)
    x_bf = features_b.astype(jnp.bfloat16)
    pad_graphs = num_groups * g - b
    if pad_graphs:
        adj_bf = jnp.pad(adj_bf, ((0, pad_graphs), (0, 0), (0, 0)))
        x_bf = jnp.pad(x_bf, ((0, pad_graphs), (0, 0), (0, 0)))

    adj_grp = adj_bf.reshape(num_groups, g, n, n)
    eye = jnp.eye(g, dtype=jnp.bfloat16)
    # per-group block-diagonal: block (i,j) = eye[i,j] * graph_i
    adj_bd = jnp.einsum("ij,tinm->tinjm", eye, adj_grp).reshape(num_groups, rows, rows)
    x_bd = x_bf.reshape(num_groups, rows, f_in)

    adj_p = jnp.pad(adj_bd, ((0, 0), (0, tile_m - rows), (0, tile_m - rows)))
    x_p = jnp.pad(x_bd, ((0, 0), (0, tile_m - rows), (0, fp - f_in)))
    w1_p = jnp.pad(w1.astype(jnp.bfloat16), ((0, fp - f_in), (0, hp - hid)))
    w2_p = jnp.pad(w2.astype(jnp.bfloat16), ((0, hp - hid), (0, gp - f_out)))

    out_p = _gcn_pallas(adj_p, x_p, w1_p, w2_p)               # [T, tile_m, gp] f32
    out = out_p[:, :rows, :f_out].reshape(num_groups * g, n, f_out)
    return out[:b]


@jax.jit
def gcn_forward(adj, features, w1, w2):
    """Single-graph forward matching GCN.forward(adj, features).

    Routed through the batched packer (review: tiny single-graph calls are
    pure launch/DMA latency; always batch)."""
    return gcn_forward_batched(adj[None], features[None], w1, w2)[0]


# ---------------------------- reference & helpers ----------------------------

def xavier_uniform(key, shape, gain):
    fan_in, fan_out = shape
    bound = gain * math.sqrt(6.0 / (fan_in + fan_out))
    return jax.random.uniform(key, shape, jnp.float32, -bound, bound)


def reference_gcn(adj, features, w1, w2):
    h = jnp.maximum(adj @ features @ w1, 0.0)
    return adj @ h @ w2


def make_graph(key, n, f_in):
    k_adj, k_feat = jax.random.split(key)
    a = jax.random.uniform(k_adj, (n, n), jnp.float32)
    a = (a + a.T) * 0.5 + jnp.eye(n, dtype=jnp.float32)
    adj = a / jnp.sum(a, axis=1, keepdims=True)   # row-normalized adjacency
    feats = jax.random.normal(k_feat, (n, f_in), jnp.float32)
    return adj, feats


if __name__ == "__main__":
    # Shapes consistent with the module: N=16 nodes, input=32, hidden=64, out=32.
    N, INPUT_SIZE, HIDDEN_SIZE, OUT_SIZE = 16, 32, 64, 32
    B = 8          # fills one 128-row group on v5e, half a 256-row group on v6e/v7x
    B_LARGE = 20   # exercises multiple grid groups + batch-pad graphs

    key = jax.random.PRNGKey(0)
    k_w1, k_w2, k_graphs = jax.random.split(key, 3)

    # Deterministic xavier_uniform_ init with gain=1.414, as in __init__.
    w1 = xavier_uniform(k_w1, (INPUT_SIZE, HIDDEN_SIZE), gain=1.414)
    w2 = xavier_uniform(k_w2, (HIDDEN_SIZE, OUT_SIZE), gain=1.414)

    graph_keys = jax.random.split(k_graphs, B_LARGE)
    graphs = [make_graph(k, N, INPUT_SIZE) for k in graph_keys]
    adj_all = jnp.stack([g[0] for g in graphs])
    feat_all = jnp.stack([g[1] for g in graphs])

    # f32 reference (kernel uses bf16 MXU inputs with f32 accumulation).
    ref_all = jax.vmap(lambda a, x: reference_gcn(a, x, w1, w2))(adj_all, feat_all)

    # --- batched path, B=8 (single group on every chip generation) ---
    out_b = gcn_forward_batched(adj_all[:B], feat_all[:B], w1, w2)
    jax.block_until_ready(out_b)
    assert out_b.shape == (B, N, OUT_SIZE)
    assert jnp.allclose(out_b, ref_all[:B], atol=5e-2, rtol=5e-2), float(
        jnp.max(jnp.abs(out_b - ref_all[:B])))

    # --- batched path, B=20 (multiple grid groups + zero-padded graphs) ---
    out_big = gcn_forward_batched(adj_all, feat_all, w1, w2)
    jax.block_until_ready(out_big)
    assert out_big.shape == (B_LARGE, N, OUT_SIZE)
    assert jnp.allclose(out_big, ref_all, atol=5e-2, rtol=5e-2), float(
        jnp.max(jnp.abs(out_big - ref_all)))

    # --- single-graph path (matches the PyTorch module's forward signature) ---
    out_0 = gcn_forward(adj_all[0], feat_all[0], w1, w2)
    jax.block_until_ready(out_0)
    assert out_0.shape == (N, OUT_SIZE)
    assert jnp.allclose(out_0, ref_all[0], atol=5e-2, rtol=5e-2)

    print("KERNEL_OK")
</pallas_src>

<mosaic_0001>
module attributes {stable_mosaic.version = 11 : i64} {
  func.func @gcn_kernel(%arg0: i32, %arg1: memref<1x128x128xbf16, #tpu.memory_space<vmem>>, %arg2: memref<1x128x128xbf16, #tpu.memory_space<vmem>>, %arg3: memref<128x128xbf16, #tpu.memory_space<vmem>>, %arg4: memref<128x128xbf16, #tpu.memory_space<vmem>>, %arg5: memref<1x128x128xf32, #tpu.memory_space<vmem>>) attributes {dimension_semantics = [#tpu.dimension_semantics<parallel>], iteration_bounds = array<i64: 1>, scalar_prefetch = 0 : i64, scratch_operands = 0 : i64, tpu.core_type = #tpu.core_type<tc>, window_params = [{transform_indices = @transform_0, window_bounds = array<i64: 1, 128, 128>}, {transform_indices = @transform_1, window_bounds = array<i64: 1, 128, 128>}, {pipeline_mode = #tpu.pipeline_mode<synchronous>, transform_indices = @transform_2, window_bounds = array<i64: 128, 128>}, {pipeline_mode = #tpu.pipeline_mode<synchronous>, transform_indices = @transform_3, window_bounds = array<i64: 128, 128>}, {transform_indices = @transform_4, window_bounds = array<i64: 1, 128, 128>}]} {
    %c0 = arith.constant 0 : index
    %c0_0 = arith.constant 0 : index
    %c0_1 = arith.constant 0 : index
    %0 = vector.load %arg1[%c0, %c0_0, %c0_1] : memref<1x128x128xbf16, #tpu.memory_space<vmem>>, vector<1x128x128xbf16>
    %1 = vector.shape_cast %0 : vector<1x128x128xbf16> to vector<128x128xbf16>
    %c0_2 = arith.constant 0 : index
    %c0_3 = arith.constant 0 : index
    %c0_4 = arith.constant 0 : index
    %2 = vector.load %arg2[%c0_2, %c0_3, %c0_4] : memref<1x128x128xbf16, #tpu.memory_space<vmem>>, vector<1x128x128xbf16>
    %3 = vector.shape_cast %2 : vector<1x128x128xbf16> to vector<128x128xbf16>
    %cst = arith.constant dense<0.000000e+00> : vector<128x128xf32>
    %4 = tpu.matmul %1, %3, %cst {dimension_numbers = #tpu.dot_dimension_numbers<[1], [0], [0], [1], [0, 0, 1, 1], [], []>} : vector<128x128xbf16>, vector<128x128xbf16>, vector<128x128xf32> -> vector<128x128xf32>
    %5 = arith.truncf %4 : vector<128x128xf32> to vector<128x128xbf16>
    %c0_5 = arith.constant 0 : index
    %c0_6 = arith.constant 0 : index
    %6 = vector.load %arg3[%c0_5, %c0_6] : memref<128x128xbf16, #tpu.memory_space<vmem>>, vector<128x128xbf16>
    %cst_7 = arith.constant dense<0.000000e+00> : vector<128x128xf32>
    %7 = tpu.matmul %5, %6, %cst_7 {dimension_numbers = #tpu.dot_dimension_numbers<[1], [0], [0], [1], [0, 0, 1, 1], [], []>} : vector<128x128xbf16>, vector<128x128xbf16>, vector<128x128xf32> -> vector<128x128xf32>
    %cst_8 = arith.constant 0.000000e+00 : f32
    %8 = vector.broadcast %cst_8 : f32 to vector<128x128xf32>
    %9 = arith.maximumf %7, %8 : vector<128x128xf32>
    %10 = arith.truncf %9 : vector<128x128xf32> to vector<128x128xbf16>
    %cst_9 = arith.constant dense<0.000000e+00> : vector<128x128xf32>
    %11 = tpu.matmul %1, %10, %cst_9 {dimension_numbers = #tpu.dot_dimension_numbers<[1], [0], [0], [1], [0, 0, 1, 1], [], []>} : vector<128x128xbf16>, vector<128x128xbf16>, vector<128x128xf32> -> vector<128x128xf32>
    %12 = arith.truncf %11 : vector<128x128xf32> to vector<128x128xbf16>
    %c0_10 = arith.constant 0 : index
    %c0_11 = arith.constant 0 : index
    %13 = vector.load %arg4[%c0_10, %c0_11] : memref<128x128xbf16, #tpu.memory_space<vmem>>, vector<128x128xbf16>
    %cst_12 = arith.constant dense<0.000000e+00> : vector<128x128xf32>
    %14 = tpu.matmul %12, %13, %cst_12 {dimension_numbers = #tpu.dot_dimension_numbers<[1], [0], [0], [1], [0, 0, 1, 1], [], []>} : vector<128x128xbf16>, vector<128x128xbf16>, vector<128x128xf32> -> vector<128x128xf32>
    %c0_13 = arith.constant 0 : index
    %c0_14 = arith.constant 0 : index
    %c0_15 = arith.constant 0 : index
    %15 = vector.load %arg5[%c0_13, %c0_14, %c0_15] : memref<1x128x128xf32, #tpu.memory_space<vmem>>, vector<1x128x128xf32>
    %16 = vector.shape_cast %15 : vector<1x128x128xf32> to vector<128x128xf32>
    %17 = vector.shape_cast %14 : vector<128x128xf32> to vector<1x128x128xf32>
    tpu.vector_store %arg5[%c0_13, %c0_14, %c0_15], %17 {strides = array<i32>} : memref<1x128x128xf32, #tpu.memory_space<vmem>>, vector<1x128x128xf32>,
    return
  }
  func.func @transform_0(%arg0: i32) -> (i32, i32, i32) {
    %c0_i32 = arith.constant 0 : i32
    %c0_i32_0 = arith.constant 0 : i32
    %c0_i32_1 = arith.constant 0 : i32
    return %arg0, %c0_i32, %c0_i32_0 : i32, i32, i32
  }
  func.func @transform_1(%arg0: i32) -> (i32, i32, i32) {
    %c0_i32 = arith.constant 0 : i32
    %c0_i32_0 = arith.constant 0 : i32
    %c0_i32_1 = arith.constant 0 : i32
    return %arg0, %c0_i32, %c0_i32_0 : i32, i32, i32
  }
  func.func @transform_2(%arg0: i32) -> (i32, i32) {
    %c0_i32 = arith.constant 0 : i32
    %c0_i32_0 = arith.constant 0 : i32
    %c0_i32_1 = arith.constant 0 : i32
    return %c0_i32, %c0_i32_0 : i32, i32
  }
  func.func @transform_3(%arg0: i32) -> (i32, i32) {
    %c0_i32 = arith.constant 0 : i32
    %c0_i32_0 = arith.constant 0 : i32
    %c0_i32_1 = arith.constant 0 : i32
    return %c0_i32, %c0_i32_0 : i32, i32
  }
  func.func @transform_4(%arg0: i32) -> (i32, i32, i32) {
    %c0_i32 = arith.constant 0 : i32
    %c0_i32_0 = arith.constant 0 : i32
    %c0_i32_1 = arith.constant 0 : i32
    return %arg0, %c0_i32, %c0_i32_0 : i32, i32, i32
  }
}

</mosaic_0001>

<bundles_post_ra>
// kernel: gcn_forward_batched.1
= control target key start
LH: loop header
LB: loop body
LE: loop exit
PB: predicated region body
PF: predicated region fallthrough
CT: control target
= control target key end

     0   :  { %s1182_s0 = inlined_call_operand.vmem [shape: bf16[1,128,128], index: 0, kind: input, shape index: {}]   ;;  %s1183_s1 = inlined_call_operand.vmem [shape: bf16[1,128,128], index: 1, kind: input, shape index: {}]   ;;  %s1184_s2 = inlined_call_operand.vmem [shape: bf16[128,128], index: 2, kind: input, shape index: {}]   ;;  %s1185_s3 = inlined_call_operand.vmem [shape: bf16[128,128], index: 3, kind: input, shape index: {}]   ;;  %s1186_s4 = inlined_call_operand.hbm [shape: f32[1,128,128], index: 4, kind: output, shape index: {}]  }
   0x1   :  { %v962_v0 = vld [vmem:[%s1183_s1] sm:$0xff]   ;;  %v963_v1 = vld [vmem:[%s1183_s1 + $0x8] sm:$0xff]   ;;  %v964_v2 = vld [vmem:[%s1183_s1 + $0x10] sm:$0xff]  }
   0x2   :  { %831 = vmatprep.subr.bf16.mxu0 %v962_v0  ;;  %v965_v3 = vld [vmem:[%s1183_s1 + $0x18] sm:$0xff]   ;;  %v970_v4 = vld [vmem:[%s1182_s0] sm:$0xff]   ;;  %v967_v6 = vld [vmem:[%s1183_s1 + $0x28] sm:$0xff]  }
   0x3   :  { %832 = vmatpush3.bf16.msra.mxu0 %v962_v0  ;;  %847 = vmatprep.mubr.bf16.mxu0 %v970_v4  ;;  %v966_v5 = vld [vmem:[%s1183_s1 + $0x20] sm:$0xff]   ;;  %v979_v8 = vld [vmem:[%s1184_s2 + $0x8] sm:$0xff]   ;;  %v968_v9 = vld [vmem:[%s1183_s1 + $0x30] sm:$0xff]  }
   0x4   :  { %833 = vmatprep.subr.bf16.mxu0 %v963_v1  ;;  %v978_v7 = vld [vmem:[%s1184_s2] sm:$0xff]   ;;  %v980_v10 = vld [vmem:[%s1184_s2 + $0x10] sm:$0xff]   ;;  %v969_v11 = vld [vmem:[%s1183_s1 + $0x38] sm:$0xff]  }
   0x5   :  { %863 = vmatprep.subr.bf16.mxu1 %v978_v7  ;;  %v981_v12 = vld [vmem:[%s1184_s2 + $0x18] sm:$0xff]   ;;  %v982_v13 = vld [vmem:[%s1184_s2 + $0x20] sm:$0xff]  }
   0x6   :  { %864 = vmatpush3.bf16.msra.mxu1 %v978_v7 }
   0x7   :  { %834 = vmatpush3.bf16.msra.mxu0 %v963_v1  ;;  %865 = vmatprep.subr.bf16.mxu1 %v979_v8 }
   0x8   :  { %835 = vmatprep.subr.bf16.mxu0 %v964_v2 }
   0xa   :  { %866 = vmatpush3.bf16.msra.mxu1 %v979_v8 }
   0xb   :  { %836 = vmatpush3.bf16.msra.mxu0 %v964_v2  ;;  %867 = vmatprep.subr.bf16.mxu1 %v980_v10 }
   0xc   :  { %837 = vmatprep.subr.bf16.mxu0 %v965_v3 }
   0xe   :  { %868 = vmatpush3.bf16.msra.mxu1 %v980_v10 }
   0xf   :  { %838 = vmatpush3.bf16.msra.mxu0 %v965_v3  ;;  %869 = vmatprep.subr.bf16.mxu1 %v981_v12 }
  0x10   :  { %839 = vmatprep.subr.bf16.mxu0 %v966_v5 }
  0x13   :  { %840 = vmatpush3.bf16.msra.mxu0 %v966_v5 }
  0x14   :  { %841 = vmatprep.subr.bf16.mxu0 %v967_v6 }
  0x17   :  { %842 = vmatpush3.bf16.msra.mxu0 %v967_v6 }
  0x18   :  { %843 = vmatprep.subr.bf16.mxu0 %v968_v9 }
  0x1b   :  { %844 = vmatpush3.bf16.msra.mxu0 %v968_v9 }
  0x1c   :  { %845 = vmatprep.subr.bf16.mxu0 %v969_v11 }
  0x1d   :  { %9 = vsyncpa [#allocation3], 0  ;;  %v1091_v14 = vld [vmem:[%s1182_s0 + $0x8] sm:$0xff]   ;;  %v1096_v15 = vld [vmem:[%s1182_s0 + $0x10] sm:$0xff]   ;;  %870 = vmatpush3.bf16.msra.mxu1 %v981_v12 }
  0x1e   :  { %871 = vmatprep.subr.bf16.mxu1 %v982_v13  ;;  %v983_v16 = vld [vmem:[%s1184_s2 + $0x28] sm:$0xff]   ;;  %v984_v17 = vld [vmem:[%s1184_s2 + $0x30] sm:$0xff]   ;;  %v1109_v18 = vld [vmem:[%s1182_s0 + $0x18] sm:$0xff]  }
  0x1f   :  { %846 = vmatpush3.bf16.msra.mxu0 %v969_v11  ;;  %v1114_v19 = vld [vmem:[%s1182_s0 + $0x20] sm:$0xff]   ;;  %v1121_v20 = vld [vmem:[%s1182_s0 + $0x28] sm:$0xff]   ;;  %v1126_v21 = vld [vmem:[%s1182_s0 + $0x30] sm:$0xff]  }
  0x20   :  { %v1133_v22 = vld [vmem:[%s1182_s0 + $0x38] sm:$0xff]   ;;  %v986_v48 = vld [vmem:[%s1185_s3] sm:$0xff]   ;;  %v987_v49 = vld [vmem:[%s1185_s3 + $0x8] sm:$0xff]  }
  0x21   :  { %872 = vmatpush3.bf16.msra.mxu1 %v982_v13  ;;  %v985_v23 = vld [vmem:[%s1184_s2 + $0x38] sm:$0xff]   ;;  %v988_v50 = vld [vmem:[%s1185_s3 + $0x10] sm:$0xff]   ;;  %v990_v52 = vld [vmem:[%s1185_s3 + $0x20] sm:$0xff]  }
  0x22   :  { %848 = vmatmul.mubr.bf16.vlgmr.msra.gmra.mrb[0].mxu0 %v1091_v14  ;;  %873 = vmatprep.subr.bf16.mxu1 %v983_v16  ;;  %v989_v51 = vld [vmem:[%s1185_s3 + $0x18] sm:$0xff]   ;;  %v991_v53 = vld [vmem:[%s1185_s3 + $0x28] sm:$0xff]   ;;  %v992_v54 = vld [vmem:[%s1185_s3 + $0x30] sm:$0xff]  }
  0x23   :  { %851 = vmatprep.mubr.bf16.mxu0 %v1096_v15 }
  0x25   :  { %874 = vmatpush3.bf16.msra.mxu1 %v983_v16 }
  0x26   :  { %875 = vmatprep.subr.bf16.mxu1 %v984_v17 }
  0x29   :  { %876 = vmatpush3.bf16.msra.mxu1 %v984_v17 }
  0x2a   :  { %852 = vmatmul.mubr.bf16.gmra.mrb[4].mxu0 %v1109_v18  ;;  %877 = vmatprep.subr.bf16.mxu1 %v985_v23 }
  0x2b   :  { %855 = vmatprep.mubr.bf16.mxu0 %v1114_v19 }
  0x2d   :  { %878 = vmatpush3.bf16.msra.mxu1 %v985_v23 }
  0x2e   :  { %927 = vmatprep.subr.bf16.mxu1 %v986_v48 }
  0x32   :  { %856 = vmatmul.mubr.bf16.gmra.mrb[8].mxu0 %v1121_v20 }
  0x33   :  { %859 = vmatprep.mubr.bf16.mxu0 %v1126_v21 }
  0x3a   :  { %860 = vmatmul.mubr.bf16.gmra.mrb[12].mxu0 %v1133_v22 }
  0x3b   :  { %911 = vmatprep.mubr.bf16.mxu0 %v970_v4 }
  0xf5   :  { %v849_v24 = vpop.f32.mrb[0].mxu0 }
  0xf6   :  { %v181_v25 = vpop.f32.mrb[1].mxu0 }
  0xf7   :  { %v850_v26 = vpop.f32.mrb[2].mxu0 }
  0xf8   :  { %v245_v27 = vpack.c.bf16 %v850_v26, %v849_v24  ;;  %v184_v28 = vpop.f32.mrb[3].mxu0 }
  0xf9   :  { %v244_v29 = vpack.c.bf16 %v184_v28, %v181_v25 }
  0xfb   :  { %879 = vmatprep.mubr.bf16.mxu1 %v244_v29 }
  0xfc   :  { %880 = vmatmul.mubr.bf16.vlgmr.msra.gmra.mrb[0].mxu1 %v245_v27 }
  0xfd   :  { %v853_v30 = vpop.f32.mrb[4].mxu0  ;;  %928 = vmatpush3.bf16.msra.mxu1 %v986_v48 }
  0xfe   :  { %v197_v31 = vpop.f32.mrb[5].mxu0  ;;  %929 = vmatprep.subr.bf16.mxu1 %v987_v49 }
  0xff   :  { %v854_v32 = vpop.f32.mrb[6].mxu0 }
 0x100   :  { %v247_v33 = vpack.c.bf16 %v854_v32, %v853_v30  ;;  %v200_v34 = vpop.f32.mrb[7].mxu0 }
 0x101   :  { %v246_v35 = vpack.c.bf16 %v200_v34, %v197_v31  ;;  %930 = vmatpush3.bf16.msra.mxu1 %v987_v49 }
 0x102   :  { %931 = vmatprep.subr.bf16.mxu1 %v988_v50 }
 0x103   :  { %883 = vmatprep.mubr.bf16.mxu1 %v246_v35 }
 0x104   :  { %884 = vmatmul.mubr.bf16.gmra.mrb[4].mxu1 %v247_v33 }
 0x105   :  { %v857_v36 = vpop.f32.mrb[8].mxu0  ;;  %932 = vmatpush3.bf16.msra.mxu1 %v988_v50 }
 0x106   :  { %v213_v37 = vpop.f32.mrb[9].mxu0  ;;  %933 = vmatprep.subr.bf16.mxu1 %v989_v51 }
 0x107   :  { %v858_v38 = vpop.f32.mrb[10].mxu0 }
 0x108   :  { %v249_v39 = vpack.c.bf16 %v858_v38, %v857_v36  ;;  %v216_v40 = vpop.f32.mrb[11].mxu0  ;;  %v993_v38 = vld [vmem:[%s1185_s3 + $0x38] sm:$0xff]   ;;  %s1018_s3 = smov [#allocation2]  }
 0x109   :  { %v248_v41 = vpack.c.bf16 %v216_v40, %v213_v37  ;;  %934 = vmatpush3.bf16.msra.mxu1 %v989_v51  ;;  %s724_s23 = sshll.u32 %s1018_s3, 4  ;;  %s725_s23 = int_to_ptr.vmem [resolvable:$true] %s724_s23 }
 0x10a   :  { %935 = vmatprep.subr.bf16.mxu1 %v990_v52  ;;  %s994_s24 = scalar_lea.vmem %s725_s23, 2048  ;;  %p999_p1 = scmp.lt.s32.totalorder %s725_s23, %s725_s23 }
 0x10b   :  { %887 = vmatprep.mubr.bf16.mxu1 %v248_v41  ;;  %p995_p0 = scmp.ne.s32.totalorder %s725_s23, %s994_s24  ;;  %p1000_p2 = scmp.lt.s32.totalorder %s994_s24, %s994_s24 }
 0x10c   :  { %888 = vmatmul.mubr.bf16.gmra.mrb[8].mxu1 %v249_v39 }
 0x10d   :  { %v861_v42 = vpop.f32.mrb[12].mxu0  ;;  %936 = vmatpush3.bf16.msra.mxu1 %v990_v52  ;;  %p1001_p3 = por %p1000_p2, %p999_p1 }
 0x10e   :  { %v229_v43 = vpop.f32.mrb[13].mxu0  ;;  %937 = vmatprep.subr.bf16.mxu1 %v991_v53 }
 0x10f   :  { %v862_v44 = vpop.f32.mrb[14].mxu0  ;;  %p1002_p4 = pnand %p1001_p3, %p995_p0 }
 0x110   :  { %v251_v45 = vpack.c.bf16 %v862_v44, %v861_v42  ;;  %v232_v46 = vpop.f32.mrb[15].mxu0 }
 0x111   :  { %v250_v47 = vpack.c.bf16 %v232_v46, %v229_v43  ;;  %938 = vmatpush3.bf16.msra.mxu1 %v991_v53 }
 0x112   :  { %939 = vmatprep.subr.bf16.mxu1 %v992_v54 }
 0x113   :  { %891 = vmatprep.mubr.bf16.mxu1 %v250_v47 }
 0x114   :  { %892 = vmatmul.mubr.bf16.gmra.mrb[12].mxu1 %v251_v45 }
 0x115   :  { %940 = vmatpush3.bf16.msra.mxu1 %v992_v54 }
 0x116   :  { %941 = vmatprep.subr.bf16.mxu1 %v993_v38 }
 0x119   :  { %942 = vmatpush3.bf16.msra.mxu1 %v993_v38 }
 0x1cf   :  { %v881_v55 = vpop.f32.mrb[0].mxu1 }
 0x1d0   :  { %v350_v56 = vpop.f32.mrb[1].mxu1  ;;  %v415_v58 = vmax.f32 %v881_v55, 0.0 }
 0x1d1   :  { %v882_v57 = vpop.f32.mrb[2].mxu1  ;;  %v413_v61 = vmax.f32 %v350_v56, 0.0 }
 0x1d2   :  { %v416_v59 = vmax.f32 %v882_v57, 0.0  ;;  %v353_v60 = vpop.f32.mrb[3].mxu1 }
 0x1d3   :  { %v414_v62 = vmax.f32 %v353_v60, 0.0 }
 0x1d4   :  { %v430_v63 = vpack.c.bf16 %v416_v59, %v415_v58 }
 0x1d5   :  { %v429_v0 = vpack.c.bf16 %v414_v62, %v413_v61 }
 0x1d7   :  { %v885_v1 = vpop.f32.mrb[4].mxu1  ;;  %895 = vmatprep.subr.bf16.mxu0 %v429_v0 }
 0x1d8   :  { %v366_v2 = vpop.f32.mrb[5].mxu1  ;;  %896 = vmatpush3.bf16.msra.mxu0 %v429_v0  ;;  %v419_v4 = vmax.f32 %v885_v1, 0.0 }
 0x1d9   :  { %v886_v3 = vpop.f32.mrb[6].mxu1  ;;  %897 = vmatprep.subr.bf16.mxu0 %v430_v63  ;;  %v417_v7 = vmax.f32 %v366_v2, 0.0 }
 0x1da   :  { %v420_v5 = vmax.f32 %v886_v3, 0.0  ;;  %v369_v6 = vpop.f32.mrb[7].mxu1 }
 0x1db   :  { %v418_v8 = vmax.f32 %v369_v6, 0.0 }
 0x1dc   :  { %v432_v9 = vpack.c.bf16 %v420_v5, %v419_v4  ;;  %898 = vmatpush3.bf16.msra.mxu0 %v430_v63 }
 0x1dd   :  { %v431_v10 = vpack.c.bf16 %v418_v8, %v417_v7 }
 0x1df   :  { %v889_v11 = vpop.f32.mrb[8].mxu1  ;;  %899 = vmatprep.subr.bf16.mxu0 %v431_v10 }
 0x1e0   :  { %v382_v12 = vpop.f32.mrb[9].mxu1  ;;  %900 = vmatpush3.bf16.msra.mxu0 %v431_v10  ;;  %v423_v16 = vmax.f32 %v889_v11, 0.0 }
 0x1e1   :  { %v890_v13 = vpop.f32.mrb[10].mxu1  ;;  %901 = vmatprep.subr.bf16.mxu0 %v432_v9  ;;  %v421_v24 = vmax.f32 %v382_v12, 0.0 }
 0x1e2   :  { %v424_v17 = vmax.f32 %v890_v13, 0.0  ;;  %v385_v23 = vpop.f32.mrb[11].mxu1 }
 0x1e3   :  { %v422_v25 = vmax.f32 %v385_v23, 0.0 }
 0x1e4   :  { %v434_v26 = vpack.c.bf16 %v424_v17, %v423_v16  ;;  %902 = vmatpush3.bf16.msra.mxu0 %v432_v9 }
 0x1e5   :  { %v433_v27 = vpack.c.bf16 %v422_v25, %v421_v24 }
 0x1e7   :  { %v893_v28 = vpop.f32.mrb[12].mxu1  ;;  %903 = vmatprep.subr.bf16.mxu0 %v433_v27 }
 0x1e8   :  { %v398_v29 = vpop.f32.mrb[13].mxu1  ;;  %904 = vmatpush3.bf16.msra.mxu0 %v433_v27  ;;  %v427_v31 = vmax.f32 %v893_v28, 0.0 }
 0x1e9   :  { %v894_v30 = vpop.f32.mrb[14].mxu1  ;;  %905 = vmatprep.subr.bf16.mxu0 %v434_v26  ;;  %v425_v34 = vmax.f32 %v398_v29, 0.0 }
 0x1ea   :  { %v428_v32 = vmax.f32 %v894_v30, 0.0  ;;  %v401_v33 = vpop.f32.mrb[15].mxu1 }
 0x1eb   :  { %v426_v35 = vmax.f32 %v401_v33, 0.0 }
 0x1ec   :  { %v436_v36 = vpack.c.bf16 %v428_v32, %v427_v31  ;;  %906 = vmatpush3.bf16.msra.mxu0 %v434_v26 }
 0x1ed   :  { %v435_v37 = vpack.c.bf16 %v426_v35, %v425_v34 }
 0x1ef   :  { %907 = vmatprep.subr.bf16.mxu0 %v435_v37 }
 0x1f0   :  { %908 = vmatpush3.bf16.msra.mxu0 %v435_v37 }
 0x1f1   :  { %909 = vmatprep.subr.bf16.mxu0 %v436_v36 }
 0x1f4   :  { %910 = vmatpush3.bf16.msra.mxu0 %v436_v36 }
 0x1f7   :  { %912 = vmatmul.mubr.bf16.vlgmr.msra.gmra.mrb[16].mxu0 %v1091_v14 }
 0x1f8   :  { %915 = vmatprep.mubr.bf16.mxu0 %v1096_v15 }
 0x1ff   :  { %916 = vmatmul.mubr.bf16.gmra.mrb[20].mxu0 %v1109_v18 }
 0x200   :  { %919 = vmatprep.mubr.bf16.mxu0 %v1114_v19 }
 0x207   :  { %920 = vmatmul.mubr.bf16.gmra.mrb[24].mxu0 %v1121_v20 }
 0x208   :  { %923 = vmatprep.mubr.bf16.mxu0 %v1126_v21 }
 0x20f   :  { %924 = vmatmul.mubr.bf16.gmra.mrb[28].mxu0 %v1133_v22 }
 0x2ca   :  { %v913_v39 = vpop.f32.mrb[16].mxu0 }
 0x2cb   :  { %v471_v14 = vpop.f32.mrb[17].mxu0 }
 0x2cc   :  { %v914_v40 = vpop.f32.mrb[18].mxu0 }
 0x2cd   :  { %v535_v15 = vpack.c.bf16 %v914_v40, %v913_v39  ;;  %v474_v41 = vpop.f32.mrb[19].mxu0 }
 0x2ce   :  { %v534_v18 = vpack.c.bf16 %v474_v41, %v471_v14 }
 0x2d0   :  { %943 = vmatprep.mubr.bf16.mxu1 %v534_v18 }
 0x2d1   :  { %944 = vmatmul.mubr.bf16.vlgmr.msra.gmra.mrb[16].mxu1 %v535_v15 }
 0x2d2   :  { %v917_v19 = vpop.f32.mrb[20].mxu0 }
 0x2d3   :  { %v487_v20 = vpop.f32.mrb[21].mxu0 }
 0x2d4   :  { %v918_v42 = vpop.f32.mrb[22].mxu0 }
 0x2d5   :  { %v537_v21 = vpack.c.bf16 %v918_v42, %v917_v19  ;;  %v490_v43 = vpop.f32.mrb[23].mxu0 }
 0x2d6   :  { %v536_v22 = vpack.c.bf16 %v490_v43, %v487_v20 }
 0x2d8   :  { %947 = vmatprep.mubr.bf16.mxu1 %v536_v22 }
 0x2d9   :  { %948 = vmatmul.mubr.bf16.gmra.mrb[20].mxu1 %v537_v21 }
 0x2da   :  { %v921_v44 = vpop.f32.mrb[24].mxu0 }
 0x2db   :  { %v503_v45 = vpop.f32.mrb[25].mxu0 }
 0x2dc   :  { %v922_v46 = vpop.f32.mrb[26].mxu0 }
 0x2dd   :  { %v539_v47 = vpack.c.bf16 %v922_v46, %v921_v44  ;;  %v506_v48 = vpop.f32.mrb[27].mxu0 }
 0x2de   :  { %v538_v49 = vpack.c.bf16 %v506_v48, %v503_v45 }
 0x2e0   :  { %951 = vmatprep.mubr.bf16.mxu1 %v538_v49 }
 0x2e1   :  { %952 = vmatmul.mubr.bf16.gmra.mrb[24].mxu1 %v539_v47 }
 0x2e2   :  { %v925_v50 = vpop.f32.mrb[28].mxu0 }
 0x2e3   :  { %v519_v51 = vpop.f32.mrb[29].mxu0 }
 0x2e4   :  { %v926_v52 = vpop.f32.mrb[30].mxu0 }
 0x2e5   :  { %v541_v53 = vpack.c.bf16 %v926_v52, %v925_v50  ;;  %v522_v54 = vpop.f32.mrb[31].mxu0 }
 0x2e6   :  { %v540_v55 = vpack.c.bf16 %v522_v54, %v519_v51 }
 0x2e8   :  { %955 = vmatprep.mubr.bf16.mxu1 %v540_v55 }
 0x2e9   :  { %956 = vmatmul.mubr.bf16.gmra.mrb[28].mxu1 %v541_v53 }
 0x3a4   :  { %v945_v56 = vpop.f32.mrb[16].mxu1 }
 0x3a5   :  { %705 = vst [vmem:[#allocation2 + $0x10] sm:$0xff] %v945_v56  ;;  %v640_v57 = vpop.f32.mrb[17].mxu1 }
 0x3a6   :  { %703 = vst [vmem:[#allocation2] sm:$0xff] %v640_v57  ;;  %v946_v58 = vpop.f32.mrb[18].mxu1 }
 0x3a7   :  { %706 = vst [vmem:[#allocation2 + $0x18] sm:$0xff] %v946_v58  ;;  %v643_v59 = vpop.f32.mrb[19].mxu1 }
 0x3a8   :  { %704 = vst [vmem:[#allocation2 + $0x8] sm:$0xff] %v643_v59 }
 0x3ac   :  { %v949_v60 = vpop.f32.mrb[20].mxu1 }
 0x3ad   :  { %709 = vst [vmem:[#allocation2 + $0x30] sm:$0xff] %v949_v60  ;;  %v656_v61 = vpop.f32.mrb[21].mxu1 }
 0x3ae   :  { %707 = vst [vmem:[#allocation2 + $0x20] sm:$0xff] %v656_v61  ;;  %v950_v62 = vpop.f32.mrb[22].mxu1 }
 0x3af   :  { %710 = vst [vmem:[#allocation2 + $0x38] sm:$0xff] %v950_v62  ;;  %v659_v63 = vpop.f32.mrb[23].mxu1 }
 0x3b0   :  { %708 = vst [vmem:[#allocation2 + $0x28] sm:$0xff] %v659_v63 }
 0x3b4   :  { %v953_v0 = vpop.f32.mrb[24].mxu1 }
 0x3b5   :  { %713 = vst [vmem:[#allocation2 + $0x50] sm:$0xff] %v953_v0  ;;  %v672_v1 = vpop.f32.mrb[25].mxu1 }
 0x3b6   :  { %711 = vst [vmem:[#allocation2 + $0x40] sm:$0xff] %v672_v1  ;;  %v954_v2 = vpop.f32.mrb[26].mxu1 }
 0x3b7   :  { %714 = vst [vmem:[#allocation2 + $0x58] sm:$0xff] %v954_v2  ;;  %v675_v3 = vpop.f32.mrb[27].mxu1 }
 0x3b8   :  { %712 = vst [vmem:[#allocation2 + $0x48] sm:$0xff] %v675_v3 }
 0x3bc   :  { %v957_v4 = vpop.f32.mrb[28].mxu1 }
 0x3bd   :  { %717 = vst [vmem:[#allocation2 + $0x70] sm:$0xff] %v957_v4  ;;  %v688_v5 = vpop.f32.mrb[29].mxu1 }
 0x3be   :  { %715 = vst [vmem:[#allocation2 + $0x60] sm:$0xff] %v688_v5  ;;  %v958_v6 = vpop.f32.mrb[30].mxu1 }
 0x3bf   :  { %718 = vst [vmem:[#allocation2 + $0x78] sm:$0xff] %v958_v6  ;;  %v691_v7 = vpop.f32.mrb[31].mxu1 }
 0x3c0   :  { %716 = vst [vmem:[#allocation2 + $0x68] sm:$0xff] %v691_v7 }
 0x3c1   :  { %1005 = shalt.err (!%p1002_p4)
}
 0x3c2   :  { %s1006_s27 = scalar_lea.hbm %s1186_s4, 2048 }
 0x3c3   :  { %p1007_p5 = scmp.ne.s32.totalorder %s1186_s4, %s1006_s27  ;;  %p1010_p6 = scmp.lt.u32.totalorder %s1006_s27, %s1186_s4 }
 0x3c5   :  { %p1012_p7 = pnand %p1010_p6, %p1007_p5 }
 0x3c7   :  { %1015 = shalt.err (!%p1012_p7)
}
 0x3c8   :  { %s1019_s6 = smov 128   ;;  %s1020_s7 = smov 8  }
 0x3c9   :  { %730 = dma.vmem_to_hbm [thread:$0]  %s725_s23, 2048, %s1186_s4, [#allocation3], %s1019_s6, %s1019_s6, %s1020_s7  }
 0x3ca   :  { %1016 = dma.done.wait [#allocation3], 2048  }
 0x3cb   :  { %1017 = vsyncadd [#allocation3], 4294965248 }
 0x3cc   :  { %734 = vsyncpa [#allocation3], 1 }

</bundles_post_ra>
